<compile_context>
chip_gen: v7x
topology: tpu7x:2x2x1
jax: 0.10.0
libtpu: 0.0.40
codegen_flags: <defaults>
</compile_context>

<pallas_src>
import jax
import jax.numpy as jnp
from jax.experimental import pallas as pl
from jax.experimental.pallas import tpu as pltpu

# ----------------------------- problem sizes --------------------------------
B = 2          # batch
C = 4          # channels
T = 8          # time steps
J = 8          # joints -> num_patches N
N = J
P = C * T      # patch dim = 32
D = P          # encoder_dim (== P, required by the L1 reconstruction loss)
H = 64         # MLP hidden dim of the synthetic transformer block
BN = B * N     # flattened token count = 16
MASKING_RATIO = 0.5
NUM_MASKED = int(MASKING_RATIO * N)              # 4
LN_EPS = 1e-5
# F.l1_loss(...) is a mean over (B, num_masked, P) elements, then divided by num_masked.
LOSS_SCALE = 1.0 / (B * NUM_MASKED * P * NUM_MASKED)

LANE = 128     # lane-padded activation / weight-block width
G = LANE       # one packed weight block = 128 lane columns
NEG_INF = -1e30  # scores stay f32, so this additive mask constant is safe

# weight block order inside the single bf16 slab (128, 8*128)
(BLK_EMB, BLK_Q, BLK_K, BLK_V, BLK_O, BLK_M1, BLK_M2, BLK_T) = range(8)
NUM_W_BLOCKS = 8

# f32 const slab rows (CVEC_ROWS, 128)
R_POS = 0                       # rows 0..15  : pos embedding, (B*N, D), lane padded
R_VEC = 16                      # rows 16..23 : small vectors (one aligned sublane tile)
V_MASKTOK, V_LN1G, V_LN1B, V_LN2G, V_LN2B, V_B2 = range(6)
R_ABIAS = 24                    # rows 24..39 : block-diagonal additive attention bias
CVEC_ROWS = 40


# ------------------------------- the kernel ---------------------------------
def simmim_kernel(dyn_ref, cvec_ref, w_ref, loss_ref):
    # dyn  : (32, 128) f32  = [patches (16 rows, col 127 == 1) ; mask (16 rows, cols < P)]
    # cvec : (40, 128) f32  = [pos ; small vectors ; attention bias]
    # w    : (128, 1024) bf16, 8 lane-aligned blocks, biases folded into row 127
    patches = dyn_ref[0:BN, :]              # f32, ones column at lane 127
    mask = dyn_ref[BN:2 * BN, :]            # f32 {0,1}, zero in all padded lanes

    pos = cvec_ref[R_POS:R_POS + BN, :]
    vblk = cvec_ref[R_VEC:R_VEC + 8, :]     # one aligned (8,128) tile of small vectors
    masktok = vblk[V_MASKTOK:V_MASKTOK + 1, :]
    ln1g = vblk[V_LN1G:V_LN1G + 1, :]
    ln1b = vblk[V_LN1B:V_LN1B + 1, :]       # lane 127 == 1 -> ones injector for bq/bk/bv
    ln2g = vblk[V_LN2G:V_LN2G + 1, :]
    ln2b = vblk[V_LN2B:V_LN2B + 1, :]       # lane 127 == 1 -> ones injector for b1
    b2v = vblk[V_B2:V_B2 + 1, :]            # b2 (+ lane 127 == 1 -> ones injector for bt)
    attn_bias = cvec_ref[R_ABIAS:R_ABIAS + BN, :][:, :BN]   # (16,16) block-diag 0 / -1e30

    def mm(a, w_bf16):
        return jnp.dot(a.astype(jnp.bfloat16), w_bf16,
                       preferred_element_type=jnp.float32)

    def layernorm(x, g, b):
        # padded lanes of x are exactly 0, so 128-lane sums equal sums over the D real lanes
        mu = jnp.sum(x, axis=-1, keepdims=True) * (1.0 / D)
        ex2 = jnp.sum(x * x, axis=-1, keepdims=True) * (1.0 / D)
        return (x - mu) * jax.lax.rsqrt(ex2 - mu * mu + LN_EPS) * g + b

    # --- patch_to_emb (+ b_emb via ones column) + mask-token substitution + pos emb ---
    emb = mm(patches, w_ref[:, BLK_EMB * G:(BLK_EMB + 1) * G])
    x = emb + mask * (masktok - emb) + pos

    # --- transformer block: pre-LN single-head attention ---
    xn = layernorm(x, ln1g, ln1b)                            # lane 127 -> 1
    qkv = mm(xn, w_ref[:, BLK_Q * G:(BLK_V + 1) * G])        # fused QKV, (16, 384)
    q = qkv[:, 0:G]                                          # 1/sqrt(D) folded into wq/bq
    k = qkv[:, G:2 * G]
    v = qkv[:, 2 * G:3 * G]                                  # lane 127 == 1 -> carries bo

    scores = jax.lax.dot_general(                            # q @ k^T, no materialized k.T
        q.astype(jnp.bfloat16), k.astype(jnp.bfloat16),
        dimension_numbers=(((1,), (1,)), ((), ())),
        preferred_element_type=jnp.float32) + attn_bias      # (16, 16), stays f32

    m = jnp.max(scores, axis=-1, keepdims=True)
    e = jnp.exp(scores - m)
    probs = e * pl.reciprocal(jnp.sum(e, axis=-1, keepdims=True), approx=True)

    pv = jnp.dot(probs.astype(jnp.bfloat16), v.astype(jnp.bfloat16),
                 preferred_element_type=jnp.float32)         # lane 127 ~= 1 (sum of probs)
    x = x + mm(pv, w_ref[:, BLK_O * G:(BLK_O + 1) * G])      # wo (+ bo)

    # --- transformer block: pre-LN MLP ---
    xn2 = layernorm(x, ln2g, ln2b)                           # lane 127 -> 1
    # TODO(synk): PyTorch nn.GELU defaults to the exact erf form; tanh approximation used here.
    h1 = jax.nn.gelu(mm(xn2, w_ref[:, BLK_M1 * G:(BLK_M1 + 1) * G]), approximate=True)
    x = x + mm(h1, w_ref[:, BLK_M2 * G:(BLK_M2 + 1) * G]) + b2v   # w2 + b2 (ones injector)

    # --- to_times head (+ bt) and masked L1 loss (normalization folded in) ---
    # Applying the linear head to all tokens and masking rows == gathering masked rows first.
    pred = mm(x, w_ref[:, BLK_T * G:(BLK_T + 1) * G])
    diff = jnp.abs(pred - patches) * mask    # mask kills padded lanes incl. the ones column
    loss_ref[0, 0] = jnp.sum(diff) * LOSS_SCALE


# ------------------------------ host-side packing ----------------------------
def pack_params(params):
    """One-time packing: 128-lane-aligned bf16 weight slab (biases folded into row 127
    via the ones-column trick) + one f32 const slab."""
    scale = jnp.float32(D ** -0.5)

    def wblock(w, b, ones_col=False):
        blk = jnp.zeros((LANE, LANE), jnp.float32)
        blk = blk.at[:w.shape[0], :w.shape[1]].set(w)
        blk = blk.at[LANE - 1, :b.shape[1]].set(b[0])
        if ones_col:                             # propagate the ones lane to the output
            blk = blk.at[LANE - 1, LANE - 1].set(1.0)
        return blk

    zero_b = jnp.zeros((1, D), jnp.float32)
    w_all = jnp.concatenate([
        wblock(params["w_emb"], params["b_emb"]),
        wblock(params["wq"] * scale, params["bq"] * scale),   # attention scale folded in
        wblock(params["wk"], params["bk"]),
        wblock(params["wv"], params["bv"], ones_col=True),    # v[:,127] = 1 carries bo
        wblock(params["wo"], params["bo"]),
        wblock(params["w1"], params["b1"]),
        wblock(params["w2"], zero_b),                         # b2 added in f32 via b2v
        wblock(params["wt"], params["bt"]),
    ], axis=1).astype(jnp.bfloat16)                           # (128, 1024)

    def vrow(v, one_at_127=False):
        r = jnp.zeros((1, LANE), jnp.float32).at[0, :v.shape[-1]].set(v.reshape(-1))
        if one_at_127:
            r = r.at[0, LANE - 1].set(1.0)
        return r

    pos = jnp.tile(params["pos_embedding"][0, 1:N + 1], (B, 1))        # (BN, D)
    pos_pad = jnp.zeros((BN, LANE), jnp.float32).at[:, :D].set(pos)

    blk_id = jnp.arange(BN) // N                                       # block-diag attn bias
    abias = jnp.where(blk_id[:, None] == blk_id[None, :], 0.0, NEG_INF).astype(jnp.float32)
    abias_pad = jnp.zeros((BN, LANE), jnp.float32).at[:, :BN].set(abias)

    cvec = jnp.concatenate([
        pos_pad,                                   # rows 0..15
        vrow(params["mask_token"]),                # 16
        vrow(params["ln1_g"]),                     # 17
        vrow(params["ln1_b"], one_at_127=True),    # 18  (ones injector for bq/bk/bv)
        vrow(params["ln2_g"]),                     # 19
        vrow(params["ln2_b"], one_at_127=True),    # 20  (ones injector for b1)
        vrow(params["b2"], one_at_127=True),       # 21  (ones injector for bt)
        jnp.zeros((2, LANE), jnp.float32),         # 22..23 padding to an aligned tile
        abias_pad,                                 # 24..39
    ], axis=0)                                     # (40, 128) f32

    return (w_all, cvec)


# ------------------------------ forward wrapper -------------------------------
@jax.jit
def simmim_6d2_forward(img, packed, mask_key):
    """img: (B, C, T, J) float32 -> scalar masked-reconstruction L1 loss."""
    w_all, cvec = packed
    b, c, t, j = img.shape

    # to_patch: Rearrange('b c t j -> b j (c t)'), flattened to (B*N, P), lane padded.
    patches = jnp.transpose(img, (0, 3, 1, 2)).reshape(b * j, c * t).astype(jnp.float32)
    patches_pad = jnp.zeros((BN, LANE), jnp.float32)
    patches_pad = patches_pad.at[:, :P].set(patches).at[:, LANE - 1].set(1.0)  # ones column

    # random masking: rand(B, N).topk(num_masked) -> {0,1} mask (plain-JAX glue)
    rscores = jax.random.uniform(mask_key, (b, j))
    _, masked_idx = jax.lax.top_k(rscores, NUM_MASKED)
    row_mask = jnp.zeros((b, j), jnp.float32).at[
        jnp.arange(b)[:, None], masked_idx].set(1.0).reshape(BN, 1)
    col_valid = (jnp.arange(LANE) < P).astype(jnp.float32)[None, :]
    mask_full = row_mask * col_valid                           # (BN, 128), 0 in padded lanes

    dyn = jnp.concatenate([patches_pad, mask_full], axis=0)    # (32, 128) f32, one DMA

    loss = pl.pallas_call(
        simmim_kernel,
        out_shape=jax.ShapeDtypeStruct((1, 1), jnp.float32),
        grid=(1,),
        in_specs=[
            pl.BlockSpec((2 * BN, LANE), lambda i: (0, 0)),               # dyn (per call)
            pl.BlockSpec((CVEC_ROWS, LANE), lambda i: (0, 0)),            # f32 const slab
            pl.BlockSpec((LANE, NUM_W_BLOCKS * LANE), lambda i: (0, 0)),  # bf16 weight slab
        ],
        out_specs=pl.BlockSpec(memory_space=pltpu.MemorySpace.SMEM),      # scalar via SMEM
        compiler_params=pltpu.CompilerParams(dimension_semantics=("arbitrary",)),
    )(dyn, cvec, w_all)

    return loss[0, 0]


# --------------------------- pure-JAX reference -------------------------------
def ref_forward(img, params, mask_key):
    """Unpacked f32 reference of the same forward pass (for a sanity check)."""
    patches = jnp.transpose(img, (0, 3, 1, 2)).reshape(B, N, P).astype(jnp.float32)
    rscores = jax.random.uniform(mask_key, (B, N))
    _, masked_idx = jax.lax.top_k(rscores, NUM_MASKED)
    bool_mask = jnp.zeros((B, N), bool).at[jnp.arange(B)[:, None], masked_idx].set(True)

    pos = params["pos_embedding"][0, 1:N + 1]
    tokens = patches @ params["w_emb"] + params["b_emb"] + pos
    mask_tokens = params["mask_token"] + pos
    tokens = jnp.where(bool_mask[..., None], mask_tokens[None], tokens)

    def ln(x, g, b):
        mu = jnp.mean(x, -1, keepdims=True)
        var = jnp.mean((x - mu) ** 2, -1, keepdims=True)
        return (x - mu) / jnp.sqrt(var + LN_EPS) * g + b

    x = tokens
    xn = ln(x, params["ln1_g"], params["ln1_b"])
    q = xn @ params["wq"] + params["bq"]
    k = xn @ params["wk"] + params["bk"]
    v = xn @ params["wv"] + params["bv"]
    att = jax.nn.softmax(jnp.einsum("bqd,bkd->bqk", q, k) * (D ** -0.5), axis=-1)
    x = x + jnp.einsum("bqk,bkd->bqd", att, v) @ params["wo"] + params["bo"]
    xn = ln(x, params["ln2_g"], params["ln2_b"])
    h = jax.nn.gelu(xn @ params["w1"] + params["b1"], approximate=True)
    x = x + h @ params["w2"] + params["b2"]
    pred = x @ params["wt"] + params["bt"]

    br = jnp.arange(B)[:, None]
    return jnp.mean(jnp.abs(pred[br, masked_idx] - patches[br, masked_idx])) / NUM_MASKED


# ----------------------------- parameter init ---------------------------------
def make_params(key):
    ks = jax.random.split(key, 24)
    w = lambda k, s: (0.02 * jax.random.normal(k, s)).astype(jnp.float32)
    return {
        "pos_embedding": w(ks[0], (1, N + 1, D)),
        "w_emb": w(ks[1], (P, D)), "b_emb": w(ks[10], (1, D)),
        "mask_token": w(ks[2], (1, D)),
        "ln1_g": (1.0 + 0.1 * jax.random.normal(ks[11], (1, D))).astype(jnp.float32),
        "ln1_b": w(ks[12], (1, D)),
        "wq": w(ks[3], (D, D)), "bq": w(ks[13], (1, D)),
        "wk": w(ks[4], (D, D)), "bk": w(ks[14], (1, D)),
        "wv": w(ks[5], (D, D)), "bv": w(ks[15], (1, D)),
        "wo": w(ks[6], (D, D)), "bo": w(ks[16], (1, D)),
        "ln2_g": (1.0 + 0.1 * jax.random.normal(ks[17], (1, D))).astype(jnp.float32),
        "ln2_b": w(ks[18], (1, D)),
        "w1": w(ks[7], (D, H)), "b1": w(ks[19], (1, H)),
        "w2": w(ks[8], (H, D)), "b2": w(ks[20], (1, D)),
        "wt": w(ks[9], (D, D)), "bt": w(ks[21], (1, D)),
    }


if __name__ == "__main__":
    root = jax.random.PRNGKey(0)
    k_param, k_img, k_mask = jax.random.split(root, 3)

    params = make_params(k_param)
    packed = pack_params(params)        # one-time host-side packing / folding
    img = jax.random.normal(k_img, (B, C, T, J), dtype=jnp.float32)

    loss = simmim_6d2_forward(img, packed, k_mask)
    loss = jax.block_until_ready(loss)
    assert jnp.isfinite(loss), "loss is not finite"

    ref = ref_forward(img, params, k_mask)
    rel = abs(float(loss) - float(ref)) / max(abs(float(ref)), 1e-6)
    assert rel < 5e-2, f"kernel {float(loss)} vs ref {float(ref)} (rel {rel:.2e})"
    print("KERNEL_OK")
</pallas_src>

<mosaic_0001>
module attributes {stable_mosaic.version = 11 : i64} {
  func.func @simmim_kernel(%arg0: i32, %arg1: memref<32x128xf32, #tpu.memory_space<vmem>>, %arg2: memref<40x128xf32, #tpu.memory_space<vmem>>, %arg3: memref<128x1024xbf16, #tpu.memory_space<vmem>>, %arg4: memref<1x1xf32, #tpu.memory_space<smem>>) attributes {dimension_semantics = [#tpu.dimension_semantics<arbitrary>], iteration_bounds = array<i64: 1>, scalar_prefetch = 0 : i64, scratch_operands = 0 : i64, tpu.core_type = #tpu.core_type<tc>, window_params = [{pipeline_mode = #tpu.pipeline_mode<synchronous>, transform_indices = @transform_0, window_bounds = array<i64: 32, 128>}, {pipeline_mode = #tpu.pipeline_mode<synchronous>, transform_indices = @transform_1, window_bounds = array<i64: 40, 128>}, {pipeline_mode = #tpu.pipeline_mode<synchronous>, transform_indices = @transform_2, window_bounds = array<i64: 128, 1024>}, {transform_indices = @transform_3, window_bounds = array<i64: 1, 1>}]} {
    %c0 = arith.constant 0 : index
    %c0_0 = arith.constant 0 : index
    %0 = vector.load %arg1[%c0, %c0_0] : memref<32x128xf32, #tpu.memory_space<vmem>>, vector<16x128xf32>
    %c16 = arith.constant 16 : index
    %c0_1 = arith.constant 0 : index
    %1 = vector.load %arg1[%c16, %c0_1] : memref<32x128xf32, #tpu.memory_space<vmem>>, vector<16x128xf32>
    %c0_2 = arith.constant 0 : index
    %c0_3 = arith.constant 0 : index
    %2 = vector.load %arg2[%c0_2, %c0_3] : memref<40x128xf32, #tpu.memory_space<vmem>>, vector<16x128xf32>
    %c16_4 = arith.constant 16 : index
    %c0_5 = arith.constant 0 : index
    %3 = vector.load %arg2[%c16_4, %c0_5] : memref<40x128xf32, #tpu.memory_space<vmem>>, vector<8x128xf32>
    %4 = vector.extract_strided_slice %3 {offsets = [0, 0], sizes = [1, 128], strides = [1, 1]} : vector<8x128xf32> to vector<1x128xf32>
    %5 = vector.extract_strided_slice %3 {offsets = [1, 0], sizes = [1, 128], strides = [1, 1]} : vector<8x128xf32> to vector<1x128xf32>
    %6 = vector.extract_strided_slice %3 {offsets = [2, 0], sizes = [1, 128], strides = [1, 1]} : vector<8x128xf32> to vector<1x128xf32>
    %7 = vector.extract_strided_slice %3 {offsets = [3, 0], sizes = [1, 128], strides = [1, 1]} : vector<8x128xf32> to vector<1x128xf32>
    %8 = vector.extract_strided_slice %3 {offsets = [4, 0], sizes = [1, 128], strides = [1, 1]} : vector<8x128xf32> to vector<1x128xf32>
    %9 = vector.extract_strided_slice %3 {offsets = [5, 0], sizes = [1, 128], strides = [1, 1]} : vector<8x128xf32> to vector<1x128xf32>
    %c24 = arith.constant 24 : index
    %c0_6 = arith.constant 0 : index
    %10 = vector.load %arg2[%c24, %c0_6] : memref<40x128xf32, #tpu.memory_space<vmem>>, vector<16x128xf32>
    %11 = vector.extract_strided_slice %10 {offsets = [0, 0], sizes = [16, 16], strides = [1, 1]} : vector<16x128xf32> to vector<16x16xf32>
    %c0_7 = arith.constant 0 : index
    %c0_8 = arith.constant 0 : index
    %12 = vector.load %arg3[%c0_7, %c0_8] : memref<128x1024xbf16, #tpu.memory_space<vmem>>, vector<128x128xbf16>
    %13 = arith.truncf %0 : vector<16x128xf32> to vector<16x128xbf16>
    %cst = arith.constant dense<0.000000e+00> : vector<16x128xf32>
    %14 = tpu.matmul %13, %12, %cst {dimension_numbers = #tpu.dot_dimension_numbers<[1], [0], [0], [1], [0, 0, 1, 1], [], []>} : vector<16x128xbf16>, vector<128x128xbf16>, vector<16x128xf32> -> vector<16x128xf32>
    %15 = vector.broadcast %4 : vector<1x128xf32> to vector<16x128xf32>
    %16 = arith.subf %15, %14 : vector<16x128xf32>
    %17 = arith.mulf %1, %16 : vector<16x128xf32>
    %18 = arith.addf %14, %17 : vector<16x128xf32>
    %19 = arith.addf %18, %2 : vector<16x128xf32>
    %cst_9 = arith.constant dense<0.000000e+00> : vector<16xf32>
    %20 = vector.multi_reduction <add>, %19, %cst_9 [1] : vector<16x128xf32> to vector<16xf32>
    %21 = vector.shape_cast %20 : vector<16xf32> to vector<16x1xf32>
    %cst_10 = arith.constant 3.125000e-02 : f32
    %22 = vector.broadcast %cst_10 : f32 to vector<16x1xf32>
    %23 = arith.mulf %21, %22 : vector<16x1xf32>
    %24 = arith.mulf %19, %19 : vector<16x128xf32>
    %cst_11 = arith.constant dense<0.000000e+00> : vector<16xf32>
    %25 = vector.multi_reduction <add>, %24, %cst_11 [1] : vector<16x128xf32> to vector<16xf32>
    %26 = vector.shape_cast %25 : vector<16xf32> to vector<16x1xf32>
    %cst_12 = arith.constant 3.125000e-02 : f32
    %27 = vector.broadcast %cst_12 : f32 to vector<16x1xf32>
    %28 = arith.mulf %26, %27 : vector<16x1xf32>
    %29 = vector.broadcast %23 : vector<16x1xf32> to vector<16x128xf32>
    %30 = arith.subf %19, %29 : vector<16x128xf32>
    %31 = arith.mulf %23, %23 : vector<16x1xf32>
    %32 = arith.subf %28, %31 : vector<16x1xf32>
    %cst_13 = arith.constant 9.99999974E-6 : f32
    %33 = vector.broadcast %cst_13 : f32 to vector<16x1xf32>
    %34 = arith.addf %32, %33 : vector<16x1xf32>
    %35 = math.rsqrt %34 : vector<16x1xf32>
    %36 = vector.broadcast %35 : vector<16x1xf32> to vector<16x128xf32>
    %37 = arith.mulf %30, %36 : vector<16x128xf32>
    %38 = vector.broadcast %5 : vector<1x128xf32> to vector<16x128xf32>
    %39 = arith.mulf %37, %38 : vector<16x128xf32>
    %40 = vector.broadcast %6 : vector<1x128xf32> to vector<16x128xf32>
    %41 = arith.addf %39, %40 : vector<16x128xf32>
    %c0_14 = arith.constant 0 : index
    %c128 = arith.constant 128 : index
    %42 = vector.load %arg3[%c0_14, %c128] : memref<128x1024xbf16, #tpu.memory_space<vmem>>, vector<128x384xbf16>
    %43 = arith.truncf %41 : vector<16x128xf32> to vector<16x128xbf16>
    %cst_15 = arith.constant dense<0.000000e+00> : vector<16x384xf32>
    %44 = tpu.matmul %43, %42, %cst_15 {dimension_numbers = #tpu.dot_dimension_numbers<[1], [0], [0], [1], [0, 0, 1, 1], [], []>} : vector<16x128xbf16>, vector<128x384xbf16>, vector<16x384xf32> -> vector<16x384xf32>
    %45 = vector.extract_strided_slice %44 {offsets = [0, 0], sizes = [16, 128], strides = [1, 1]} : vector<16x384xf32> to vector<16x128xf32>
    %46 = vector.extract_strided_slice %44 {offsets = [0, 128], sizes = [16, 128], strides = [1, 1]} : vector<16x384xf32> to vector<16x128xf32>
    %47 = vector.extract_strided_slice %44 {offsets = [0, 256], sizes = [16, 128], strides = [1, 1]} : vector<16x384xf32> to vector<16x128xf32>
    %48 = arith.truncf %45 : vector<16x128xf32> to vector<16x128xbf16>
    %49 = arith.truncf %46 : vector<16x128xf32> to vector<16x128xbf16>
    %cst_16 = arith.constant dense<0.000000e+00> : vector<16x16xf32>
    %50 = tpu.matmul %48, %49, %cst_16 {dimension_numbers = #tpu.dot_dimension_numbers<[1], [1], [0], [0], [0, 0, 1, 0], [], []>} : vector<16x128xbf16>, vector<16x128xbf16>, vector<16x16xf32> -> vector<16x16xf32>
    %51 = arith.addf %50, %11 : vector<16x16xf32>
    %cst_17 = arith.constant dense<0xFF800000> : vector<16xf32>
    %52 = vector.multi_reduction <maximumf>, %51, %cst_17 [1] : vector<16x16xf32> to vector<16xf32>
    %53 = vector.shape_cast %52 : vector<16xf32> to vector<16x1xf32>
    %54 = vector.broadcast %53 : vector<16x1xf32> to vector<16x16xf32>
    %55 = arith.subf %51, %54 : vector<16x16xf32>
    %56 = math.exp %55 : vector<16x16xf32>
    %cst_18 = arith.constant dense<0.000000e+00> : vector<16xf32>
    %57 = vector.multi_reduction <add>, %56, %cst_18 [1] : vector<16x16xf32> to vector<16xf32>
    %58 = vector.shape_cast %57 : vector<16xf32> to vector<16x1xf32>
    %59 = tpu.reciprocal %58 {approx = true} : vector<16x1xf32> -> vector<16x1xf32>
    %60 = vector.broadcast %59 : vector<16x1xf32> to vector<16x16xf32>
    %61 = arith.mulf %56, %60 : vector<16x16xf32>
    %62 = arith.truncf %61 : vector<16x16xf32> to vector<16x16xbf16>
    %63 = arith.truncf %47 : vector<16x128xf32> to vector<16x128xbf16>
    %cst_19 = arith.constant dense<0.000000e+00> : vector<16x128xf32>
    %64 = tpu.matmul %62, %63, %cst_19 {dimension_numbers = #tpu.dot_dimension_numbers<[1], [0], [0], [1], [0, 0, 1, 1], [], []>} : vector<16x16xbf16>, vector<16x128xbf16>, vector<16x128xf32> -> vector<16x128xf32>
    %c0_20 = arith.constant 0 : index
    %c512 = arith.constant 512 : index
    %65 = vector.load %arg3[%c0_20, %c512] : memref<128x1024xbf16, #tpu.memory_space<vmem>>, vector<128x128xbf16>
    %66 = arith.truncf %64 : vector<16x128xf32> to vector<16x128xbf16>
    %cst_21 = arith.constant dense<0.000000e+00> : vector<16x128xf32>
    %67 = tpu.matmul %66, %65, %cst_21 {dimension_numbers = #tpu.dot_dimension_numbers<[1], [0], [0], [1], [0, 0, 1, 1], [], []>} : vector<16x128xbf16>, vector<128x128xbf16>, vector<16x128xf32> -> vector<16x128xf32>
    %68 = arith.addf %19, %67 : vector<16x128xf32>
    %cst_22 = arith.constant dense<0.000000e+00> : vector<16xf32>
    %69 = vector.multi_reduction <add>, %68, %cst_22 [1] : vector<16x128xf32> to vector<16xf32>
    %70 = vector.shape_cast %69 : vector<16xf32> to vector<16x1xf32>
    %cst_23 = arith.constant 3.125000e-02 : f32
    %71 = vector.broadcast %cst_23 : f32 to vector<16x1xf32>
    %72 = arith.mulf %70, %71 : vector<16x1xf32>
    %73 = arith.mulf %68, %68 : vector<16x128xf32>
    %cst_24 = arith.constant dense<0.000000e+00> : vector<16xf32>
    %74 = vector.multi_reduction <add>, %73, %cst_24 [1] : vector<16x128xf32> to vector<16xf32>
    %75 = vector.shape_cast %74 : vector<16xf32> to vector<16x1xf32>
    %cst_25 = arith.constant 3.125000e-02 : f32
    %76 = vector.broadcast %cst_25 : f32 to vector<16x1xf32>
    %77 = arith.mulf %75, %76 : vector<16x1xf32>
    %78 = vector.broadcast %72 : vector<16x1xf32> to vector<16x128xf32>
    %79 = arith.subf %68, %78 : vector<16x128xf32>
    %80 = arith.mulf %72, %72 : vector<16x1xf32>
    %81 = arith.subf %77, %80 : vector<16x1xf32>
    %cst_26 = arith.constant 9.99999974E-6 : f32
    %82 = vector.broadcast %cst_26 : f32 to vector<16x1xf32>
    %83 = arith.addf %81, %82 : vector<16x1xf32>
    %84 = math.rsqrt %83 : vector<16x1xf32>
    %85 = vector.broadcast %84 : vector<16x1xf32> to vector<16x128xf32>
    %86 = arith.mulf %79, %85 : vector<16x128xf32>
    %87 = vector.broadcast %7 : vector<1x128xf32> to vector<16x128xf32>
    %88 = arith.mulf %86, %87 : vector<16x128xf32>
    %89 = vector.broadcast %8 : vector<1x128xf32> to vector<16x128xf32>
    %90 = arith.addf %88, %89 : vector<16x128xf32>
    %c0_27 = arith.constant 0 : index
    %c640 = arith.constant 640 : index
    %91 = vector.load %arg3[%c0_27, %c640] : memref<128x1024xbf16, #tpu.memory_space<vmem>>, vector<128x128xbf16>
    %92 = arith.truncf %90 : vector<16x128xf32> to vector<16x128xbf16>
    %cst_28 = arith.constant dense<0.000000e+00> : vector<16x128xf32>
    %93 = tpu.matmul %92, %91, %cst_28 {dimension_numbers = #tpu.dot_dimension_numbers<[1], [0], [0], [1], [0, 0, 1, 1], [], []>} : vector<16x128xbf16>, vector<128x128xbf16>, vector<16x128xf32> -> vector<16x128xf32>
    %94 = arith.mulf %93, %93 : vector<16x128xf32>
    %95 = arith.mulf %93, %94 : vector<16x128xf32>
    %cst_29 = arith.constant 4.471500e-02 : f32
    %96 = vector.broadcast %cst_29 : f32 to vector<16x128xf32>
    %97 = arith.mulf %96, %95 : vector<16x128xf32>
    %98 = arith.addf %93, %97 : vector<16x128xf32>
    %cst_30 = arith.constant 0.797884583 : f32
    %99 = vector.broadcast %cst_30 : f32 to vector<16x128xf32>
    %100 = arith.mulf %99, %98 : vector<16x128xf32>
    %101 = math.tanh %100 : vector<16x128xf32>
    %cst_31 = arith.constant 1.000000e+00 : f32
    %102 = vector.broadcast %cst_31 : f32 to vector<16x128xf32>
    %103 = arith.addf %102, %101 : vector<16x128xf32>
    %cst_32 = arith.constant 5.000000e-01 : f32
    %104 = vector.broadcast %cst_32 : f32 to vector<16x128xf32>
    %105 = arith.mulf %104, %103 : vector<16x128xf32>
    %106 = arith.mulf %93, %105 : vector<16x128xf32>
    %c0_33 = arith.constant 0 : index
    %c768 = arith.constant 768 : index
    %107 = vector.load %arg3[%c0_33, %c768] : memref<128x1024xbf16, #tpu.memory_space<vmem>>, vector<128x128xbf16>
    %108 = arith.truncf %106 : vector<16x128xf32> to vector<16x128xbf16>
    %cst_34 = arith.constant dense<0.000000e+00> : vector<16x128xf32>
    %109 = tpu.matmul %108, %107, %cst_34 {dimension_numbers = #tpu.dot_dimension_numbers<[1], [0], [0], [1], [0, 0, 1, 1], [], []>} : vector<16x128xbf16>, vector<128x128xbf16>, vector<16x128xf32> -> vector<16x128xf32>
    %110 = arith.addf %68, %109 : vector<16x128xf32>
    %111 = vector.broadcast %9 : vector<1x128xf32> to vector<16x128xf32>
    %112 = arith.addf %110, %111 : vector<16x128xf32>
    %c0_35 = arith.constant 0 : index
    %c896 = arith.constant 896 : index
    %113 = vector.load %arg3[%c0_35, %c896] : memref<128x1024xbf16, #tpu.memory_space<vmem>>, vector<128x128xbf16>
    %114 = arith.truncf %112 : vector<16x128xf32> to vector<16x128xbf16>
    %cst_36 = arith.constant dense<0.000000e+00> : vector<16x128xf32>
    %115 = tpu.matmul %114, %113, %cst_36 {dimension_numbers = #tpu.dot_dimension_numbers<[1], [0], [0], [1], [0, 0, 1, 1], [], []>} : vector<16x128xbf16>, vector<128x128xbf16>, vector<16x128xf32> -> vector<16x128xf32>
    %116 = arith.subf %115, %0 : vector<16x128xf32>
    %117 = math.absf %116 : vector<16x128xf32>
    %118 = arith.mulf %117, %1 : vector<16x128xf32>
    %119 = vector.shape_cast %118 : vector<16x128xf32> to vector<1x16x128xf32>
    %cst_37 = arith.constant dense<0.000000e+00> : vector<1xf32>
    %120 = vector.multi_reduction <add>, %119, %cst_37 [1, 2] : vector<1x16x128xf32> to vector<1xf32>
    %121 = vector.shape_cast %120 : vector<1xf32> to vector<1x1x1xf32>
    %122 = vector.extract %121[0, 0, 0] : f32 from vector<1x1x1xf32>
    %cst_38 = arith.constant 9.765625E-4 : f32
    %123 = arith.mulf %122, %cst_38 : f32
    %c0_39 = arith.constant 0 : index
    %c0_40 = arith.constant 0 : index
    %124 = memref.load %arg4[%c0_39, %c0_40] : memref<1x1xf32, #tpu.memory_space<smem>>
    memref.store %123, %arg4[%c0_39, %c0_40] : memref<1x1xf32, #tpu.memory_space<smem>>
    return
  }
  func.func @transform_0(%arg0: i32) -> (i32, i32) {
    %c0_i32 = arith.constant 0 : i32
    %c0_i32_0 = arith.constant 0 : i32
    %c0_i32_1 = arith.constant 0 : i32
    return %c0_i32, %c0_i32_0 : i32, i32
  }
  func.func @transform_1(%arg0: i32) -> (i32, i32) {
    %c0_i32 = arith.constant 0 : i32
    %c0_i32_0 = arith.constant 0 : i32
    %c0_i32_1 = arith.constant 0 : i32
    return %c0_i32, %c0_i32_0 : i32, i32
  }
  func.func @transform_2(%arg0: i32) -> (i32, i32) {
    %c0_i32 = arith.constant 0 : i32
    %c0_i32_0 = arith.constant 0 : i32
    %c0_i32_1 = arith.constant 0 : i32
    return %c0_i32, %c0_i32_0 : i32, i32
  }
  func.func @transform_3(%arg0: i32) -> (i32, i32) {
    %c0_i32 = arith.constant 0 : i32
    %c0_i32_0 = arith.constant 0 : i32
    %c0_i32_1 = arith.constant 0 : i32
    return %c0_i32, %c0_i32_0 : i32, i32
  }
}

</mosaic_0001>

<bundles_post_ra>
// kernel: mul.16
= control target key start
LH: loop header
LB: loop body
LE: loop exit
PB: predicated region body
PF: predicated region fallthrough
CT: control target
= control target key end

     0   :  { %vm7_vm0 = vcmask 64512   ;;  %vm13_vm1 = vcmask 130112   ;;  %s39_s0 = inlined_call_operand.vmem [shape: f32[2,8], index: 0, kind: input, shape index: {}]   ;;  %s40_s1 = inlined_call_operand.vmem [shape: f32[16], index: 1, kind: output, shape index: {}]  }
   0x1   :  { %v4_v0 = vld [vmem:[%s39_s0] sm:$0x3]  ;;  %s22_s0 = smov 8  }
   0x2   :  { %5 = vst [vmem:[#allocation1] sm:$0x3] %v4_v0 }
   0x9   :  { %v10_v1 = vld [vmem:[#allocation1 + $0x1] sm:$0x1]   ;;  %v6_v2 = vld [vmem:[#allocation1] sm:$0x1]  }
   0xa   :  { %11 = vrot.lane.b32.xlu0 %v10_v1, %s22_s0  ;;  %8 = vst.msk [vmem:[#allocation0] sm:$0x1] %vm7_vm0, %v6_v2  }
  0x7c   :  { %v12_v3 = vpop.permute.xlu0 %11  }
  0x7d   :  { %14 = vst.msk [vmem:[#allocation0] sm:$0x1] %vm13_vm1, %v12_v3  }
  0x84   :  { %v18_v4 = vld [vmem:[#allocation0] sm:$0x1] }
  0x85   :  { %20 = vst [vmem:[%s40_s1] sm:$0x1] %v18_v4 }

// kernel: simmim_6d2_forward.1
= control target key start
LH: loop header
LB: loop body
LE: loop exit
PB: predicated region body
PF: predicated region fallthrough
CT: control target
= control target key end

     0   :  { %v1353_v2 = vmov 0.0   ;;  %vm1354_vm0 = vmmov 0   ;;  %s1883_s0 = inlined_call_operand.vmem [shape: f32[32,128], index: 0, kind: input, shape index: {}]   ;;  %s1884_s1 = inlined_call_operand.vmem [shape: f32[40,128], index: 1, kind: input, shape index: {}]   ;;  %s1885_s2 = inlined_call_operand.vmem [shape: bf16[128,1024], index: 2, kind: input, shape index: {}]   ;;  %s1886_s3 = inlined_call_operand.hbm [shape: f32[1,1], index: 3, kind: output, shape index: {}]  }
   0x1   :  { %v25_v0 = vld [vmem:[%s1885_s2] sm:$0xf]  ;;  %1183 = vmatprep.subr.bf16.mxu0 %v1353_v2  ;;  %1199 = vmatprep.mubr.msk.bf16.mxu0 %vm1354_vm0, %v1353_v2 }
   0x2   :  { %v26_v1 = vld [vmem:[%s1885_s2 + $0x20] sm:$0xf] }
   0x3   :  { %v1060_v3 = vcombine.low %v25_v0, %v26_v1  ;;  %v27_v4 = vld [vmem:[%s1885_s2 + $0x40] sm:$0xf] }
   0x4   :  { %v28_v5 = vld [vmem:[%s1885_s2 + $0x60] sm:$0xf] }
   0x5   :  { %1184 = vmatpush3.bf16.msra.mxu0 %v1060_v3  ;;  %v1061_v6 = vcombine.low %v27_v4, %v28_v5  ;;  %v29_v7 = vld [vmem:[%s1885_s2 + $0x80] sm:$0xf] }
   0x6   :  { %1185 = vmatprep.subr.bf16.mxu0 %v1353_v2  ;;  %v30_v8 = vld [vmem:[%s1885_s2 + $0xa0] sm:$0xf] }
   0x7   :  { %v1062_v9 = vcombine.low %v29_v7, %v30_v8 }
   0x9   :  { %1186 = vmatpush3.bf16.msra.mxu0 %v1061_v6 }
   0xa   :  { %8 = vsyncpa [#allocation3], 0  ;;  %1187 = vmatprep.subr.bf16.mxu0 %v1353_v2  ;;  %v31_v10 = vld [vmem:[%s1885_s2 + $0xc0] sm:$0xf]  ;;  %v1442_v26 = vld [vmem:[%s1883_s0 + $0x8] sm:$0xff]  ;;  %v131_v31 = vlaneseq  ;;  %vm469_vm1 = vcmask 130048  }
   0xb   :  { %v32_v11 = vld [vmem:[%s1885_s2 + $0xe0] sm:$0xf]  ;;  %v181_v28 = vld [vmem:[%s1885_s2 + $0x4] sm:$0xff]  ;;  %v1462_v34 = vld [vmem:[%s1884_s1 + $0x10] sm:$0xff]  ;;  %s1341_s29 = scalar_lea.hbm %s1886_s3, 16 }
   0xc   :  { %v1063_v12 = vcombine.low %v31_v10, %v32_v11  ;;  %v33_v13 = vld [vmem:[%s1885_s2 + $0x100] sm:$0xf]  ;;  %v183_v29 = vld [vmem:[%s1885_s2 + $0x24] sm:$0xff]  ;;  %v1456_v32 = vshrl.u32 %v131_v31, 7  ;;  %v1468_v36 = vld [vmem:[%s1883_s0 + $0x10] sm:$0xff]  ;;  %p1342_p0 = scmp.ne.s32.totalorder %s1886_s3, %s1341_s29  ;;  %p1345_p1 = scmp.lt.u32.totalorder %s1341_s29, %s1886_s3 }
   0xd   :  { %1188 = vmatpush3.bf16.msra.mxu0 %v1062_v9  ;;  %v34_v14 = vld [vmem:[%s1885_s2 + $0x120] sm:$0xf]  ;;  %v1069_v30 = vcombine.high %v181_v28, %v183_v29  ;;  %v1473_v40 = vld [vmem:[%s1883_s0 + $0x18] sm:$0xff]  ;;  %v21_v48 = vld [vmem:[%s1884_s1 + $0x8] sm:$0xff]  ;;  %v1068_v56 = vcombine.low %v181_v28, %v183_v29 }
   0xe   :  { %1189 = vmatprep.subr.bf16.mxu0 %v1353_v2  ;;  %v1064_v15 = vcombine.low %v33_v13, %v34_v14  ;;  %v35_v16 = vld [vmem:[%s1885_s2 + $0x140] sm:$0xf]  ;;  %v133_v33 = vsub.s32 0, %v1456_v32  ;;  %v182_v54 = vld [vmem:[%s1885_s2 + $0xc] sm:$0xf]  ;;  %v185_v58 = vld [vmem:[%s1885_s2 + $0x44] sm:$0xff]  ;;  %p1347_p2 = pnand %p1345_p1, %p1342_p0 }
   0xf   :  { %v36_v17 = vld [vmem:[%s1885_s2 + $0x160] sm:$0xf]  ;;  %342 = vmatprep.subr.bf16.mxu1 %v1069_v30  ;;  %v184_v55 = vld [vmem:[%s1885_s2 + $0x2c] sm:$0xf]  ;;  %v187_v59 = vld [vmem:[%s1885_s2 + $0x64] sm:$0xff] }
  0x10   :  { %v1065_v18 = vcombine.low %v35_v16, %v36_v17  ;;  %v37_v19 = vld [vmem:[%s1885_s2 + $0x180] sm:$0xf]  ;;  %v134_v35 = vrot.slane %v1462_v34, %v133_v33  ;;  %v1070_v57 = vcombine.low %v182_v54, %v184_v55  ;;  %343 = vmatpush1.bf16.msra.mxu1 %v1068_v56  ;;  %v1072_v60 = vcombine.high %v185_v58, %v187_v59  ;;  %v186_v61 = vld [vmem:[%s1885_s2 + $0x4c] sm:$0xf]  ;;  %v189_v1 = vld [vmem:[%s1885_s2 + $0x84] sm:$0xff] }
  0x11   :  { %1190 = vmatpush3.bf16.msra.mxu0 %v1063_v12  ;;  %v38_v20 = vld [vmem:[%s1885_s2 + $0x1a0] sm:$0xf]  ;;  %v188_v62 = vld [vmem:[%s1885_s2 + $0x6c] sm:$0xf]  ;;  %v1071_v63 = vcombine.low %v185_v58, %v187_v59  ;;  %v191_v3 = vld [vmem:[%s1885_s2 + $0xa4] sm:$0xff] }
  0x12   :  { %1191 = vmatprep.subr.bf16.mxu0 %v1353_v2  ;;  %v1066_v21 = vcombine.low %v37_v19, %v38_v20  ;;  %v39_v22 = vld [vmem:[%s1885_s2 + $0x1c0] sm:$0xf]  ;;  %v1073_v0 = vcombine.low %v186_v61, %v188_v62  ;;  %344 = vmatprep.subr.bf16.mxu1 %v1072_v60  ;;  %v1075_v4 = vcombine.high %v189_v1, %v191_v3  ;;  %v190_v5 = vld [vmem:[%s1885_s2 + $0x8c] sm:$0xf]  ;;  %v193_v9 = vld [vmem:[%s1885_s2 + $0xc4] sm:$0xff] }
  0x13   :  { %v40_v23 = vld [vmem:[%s1885_s2 + $0x1e0] sm:$0xf]  ;;  %v192_v6 = vld [vmem:[%s1885_s2 + $0xac] sm:$0xf]  ;;  %v1074_v7 = vcombine.low %v189_v1, %v191_v3  ;;  %v195_v10 = vld [vmem:[%s1885_s2 + $0xe4] sm:$0xff] }
  0x14   :  { %v1067_v24 = vcombine.low %v39_v22, %v40_v23  ;;  %v1437_v25 = vld [vmem:[%s1883_s0] sm:$0xff]  ;;  %345 = vmatpush1.bf16.msra.mxu1 %v1071_v63  ;;  %v1076_v8 = vcombine.low %v190_v5, %v192_v6  ;;  %v1078_v11 = vcombine.high %v193_v9, %v195_v10  ;;  %v194_v12 = vld [vmem:[%s1885_s2 + $0xcc] sm:$0xf]  ;;  %v1077_v14 = vcombine.low %v193_v9, %v195_v10 }
  0x15   :  { %1192 = vmatpush3.bf16.msra.mxu0 %v1064_v15  ;;  %v41_v27 = vpack.c.bf16 %v1442_v26, %v1437_v25  ;;  %v20_v45 = vld [vmem:[%s1884_s1] sm:$0xff]  ;;  %346 = vmatprep.subr.bf16.mxu1 %v1075_v4  ;;  %v196_v13 = vld [vmem:[%s1885_s2 + $0xec] sm:$0xf]  ;;  %v171_v4 = vsub.s32 1, %v1456_v32  ;;  %v177_v9 = vsub.s32 2, %v1456_v32 }
  0x16   :  { %1193 = vmatprep.subr.bf16.mxu0 %v1353_v2  ;;  %v1079_v15 = vcombine.low %v194_v12, %v196_v13  ;;  %v197_v16 = vld [vmem:[%s1885_s2 + $0x104] sm:$0xff]  ;;  %v202_v29 = vld [vmem:[%s1885_s2 + $0x14c] sm:$0xf] }
  0x17   :  { %v199_v17 = vld [vmem:[%s1885_s2 + $0x124] sm:$0xff]  ;;  %v204_v30 = vld [vmem:[%s1885_s2 + $0x16c] sm:$0xf] }
  0x18   :  { %347 = vmatpush1.bf16.msra.mxu1 %v1074_v7  ;;  %v1081_v19 = vcombine.high %v197_v16, %v199_v17  ;;  %v1080_v20 = vcombine.low %v197_v16, %v199_v17  ;;  %v201_v22 = vld [vmem:[%s1885_s2 + $0x144] sm:$0xff] }
  0x19   :  { %1194 = vmatpush3.bf16.msra.mxu0 %v1065_v18  ;;  %348 = vmatprep.subr.bf16.mxu1 %v1078_v11  ;;  %v198_v18 = vld [vmem:[%s1885_s2 + $0x10c] sm:$0xf]  ;;  %v203_v23 = vld [vmem:[%s1885_s2 + $0x164] sm:$0xff] }
  0x1a   :  { %1195 = vmatprep.subr.bf16.mxu0 %v1353_v2  ;;  %v1084_v28 = vcombine.high %v201_v22, %v203_v23  ;;  %v205_v31 = vld [vmem:[%s1885_s2 + $0x184] sm:$0xff] }
  0x1b   :  { %v207_v33 = vld [vmem:[%s1885_s2 + $0x1a4] sm:$0xff] }
  0x1c   :  { %349 = vmatpush1.bf16.msra.mxu1 %v1077_v14  ;;  %v178_v14 = vrot.slane %v1462_v34, %v177_v9  ;;  %v543_v9 = vld [vmem:[%s1885_s2 + $0xb0] sm:$0xf] }
  0x1d   :  { %1196 = vmatpush3.bf16.msra.mxu0 %v1066_v21  ;;  %v200_v21 = vld [vmem:[%s1885_s2 + $0x12c] sm:$0xf]  ;;  %350 = vmatprep.subr.bf16.mxu1 %v1081_v19 }
  0x1e   :  { %1197 = vmatprep.subr.bf16.mxu0 %v1353_v2 }
  0x20   :  { %351 = vmatpush1.bf16.msra.mxu1 %v1080_v20 }
  0x21   :  { %1198 = vmatpush3.bf16.msra.mxu0 %v1067_v24  ;;  %v1355_v24 = vmov 0   ;;  %352 = vmatprep.subr.bf16.mxu1 %v1084_v28 }
  0x22   :  { %1203 = vmatprep.subr.bf16.mxu0 %v1353_v2  ;;  %374 = vmatprep.mubr.bf16.mxu1 %v1355_v24 }
  0x24   :  { %1200 = vmatmul.mubr.bf16.vlgmr.msra.gmra.mrb[0].mxu0 %v41_v27  ;;  %v1082_v27 = vcombine.low %v198_v18, %v200_v21 }
  0x25   :  { %1219 = vmatprep.mubr.msk.bf16.mxu0 %vm1354_vm0, %v1353_v2  ;;  %1204 = vmatpush3.bf16.msra.mxu0 %v1070_v57 }
  0x26   :  { %1205 = vmatprep.subr.bf16.mxu0 %v1353_v2 }
  0x29   :  { %1206 = vmatpush3.bf16.msra.mxu0 %v1073_v0 }
  0x2a   :  { %1207 = vmatprep.subr.bf16.mxu0 %v1353_v2 }
  0x2d   :  { %1208 = vmatpush3.bf16.msra.mxu0 %v1076_v8  ;;  %v172_v8 = vrot.slane %v1462_v34, %v171_v4 }
  0x2e   :  { %1209 = vmatprep.subr.bf16.mxu0 %v1353_v2 }
  0x31   :  { %1210 = vmatpush3.bf16.msra.mxu0 %v1079_v15 }
  0x32   :  { %1211 = vmatprep.subr.bf16.mxu0 %v1353_v2 }
  0x35   :  { %1212 = vmatpush3.bf16.msra.mxu0 %v1082_v27 }
  0x36   :  { %1213 = vmatprep.subr.bf16.mxu0 %v1353_v2 }
  0xf7   :  { %v124_v37 = vpop.f32.mrb[0].mxu0 }
  0xf8   :  { %v135_v38 = vsub.f32 %v134_v35, %v124_v37  ;;  %v1201_v39 = vpop.f32.mrb[1].mxu0 }
  0xf9   :  { %v127_v41 = vpop.f32.mrb[2].mxu0  ;;  %v206_v39 = vld [vmem:[%s1885_s2 + $0x18c] sm:$0xf] }
  0xfa   :  { %v137_v42 = vmul.f32 %v135_v38, %v1468_v36  ;;  %v136_v43 = vsub.f32 %v134_v35, %v127_v41  ;;  %v1202_v44 = vpop.f32.mrb[3].mxu0  ;;  %v1083_v35 = vcombine.low %v201_v22, %v203_v23  ;;  %v1087_v38 = vcombine.high %v205_v31, %v207_v33 }
  0xfb   :  { %v1086_v44 = vcombine.low %v205_v31, %v207_v33  ;;  %v23_v33 = vld [vmem:[%s1884_s1 + $0x18] sm:$0xff] }
  0xfc   :  { %v139_v46 = vadd.f32 %v137_v42, %v124_v37  ;;  %v138_v47 = vmul.f32 %v136_v43, %v1473_v40  ;;  %v1085_v37 = vcombine.low %v202_v29, %v204_v30  ;;  %v209_v42 = vld [vmem:[%s1885_s2 + $0x1c4] sm:$0xff]  ;;  %353 = vmatpush1.bf16.msra.mxu1 %v1083_v35 }
  0xfd   :  { %v211_v43 = vld [vmem:[%s1885_s2 + $0x1e4] sm:$0xff]  ;;  %354 = vmatprep.subr.bf16.mxu1 %v1087_v38 }
  0xfe   :  { %v1483_v49 = vadd.f32 %v139_v46, %v20_v45  ;;  %v140_v50 = vadd.f32 %v138_v47, %v127_v41  ;;  %v208_v41 = vld [vmem:[%s1885_s2 + $0x1ac] sm:$0xf]  ;;  %1214 = vmatpush3.bf16.msra.mxu0 %v1085_v37  ;;  %v1090_v46 = vcombine.high %v209_v42, %v211_v43  ;;  %v24_v37 = vld [vmem:[%s1884_s1 + $0x20] sm:$0xff] }
  0xff   :  { %v1088_v45 = vcombine.low %v206_v39, %v208_v41  ;;  %1215 = vmatprep.subr.bf16.mxu0 %v1353_v2  ;;  %v210_v47 = vld [vmem:[%s1885_s2 + $0x1cc] sm:$0xf] }
 0x100   :  { %v1485_v51 = vadd.f32 %v140_v50, %v21_v48  ;;  %143 = vadd.xlane.f32.xlu0 %v1483_v49  ;;  %v149_v52 = vmul.f32 %v1483_v49, %v1483_v49  ;;  %v212_v48 = vld [vmem:[%s1885_s2 + $0x1ec] sm:$0xf]  ;;  %355 = vmatpush1.bf16.msra.mxu1 %v1086_v44  ;;  %v1089_v50 = vcombine.low %v209_v42, %v211_v43 }
 0x101   :  { %356 = vmatprep.subr.bf16.mxu1 %v1090_v46 }
 0x102   :  { %151 = vadd.xlane.f32.xlu1 %v149_v52  ;;  %v150_v53 = vmul.f32 %v1485_v51, %v1485_v51  ;;  %1216 = vmatpush3.bf16.msra.mxu0 %v1088_v45  ;;  %v1091_v52 = vcombine.low %v210_v47, %v212_v48 }
 0x103   :  { %1217 = vmatprep.subr.bf16.mxu0 %v1353_v2 }
 0x104   :  { %145 = vadd.xlane.f32.xlu0 %v1485_v51  ;;  %357 = vmatpush1.bf16.msra.mxu1 %v1089_v50 }
 0x105   :  { %1223 = vmatprep.subr.bf16.mxu1 %v1353_v2 }
 0x106   :  { %153 = vadd.xlane.f32.xlu1 %v150_v53  ;;  %1218 = vmatpush3.bf16.msra.mxu0 %v1091_v52 }
 0x107   :  { %1255 = vmatprep.subr.bf16.mxu0 %v1353_v2 }
 0x18d   :  { %v144_v53 = vpop.xlane.xlu0 %143 }
 0x18e   :  { %v147_v54 = vmul.f32 0.03125, %v144_v53 }
 0x18f   :  { %v152_v55 = vpop.xlane.xlu1 %151 }
 0x190   :  { %v159_v56 = vmul.f32 %v147_v54, %v147_v54  ;;  %v155_v57 = vmul.f32 0.03125, %v152_v55  ;;  %v157_v5 = vsub.f32 %v1483_v49, %v147_v54 }
 0x191   :  { %v146_v58 = vpop.xlane.xlu0 %145 }
 0x192   :  { %v161_v59 = vsub.f32 %v155_v57, %v159_v56  ;;  %v148_v60 = vmul.f32 0.03125, %v146_v58 }
 0x193   :  { %v154_v61 = vpop.xlane.xlu1 %153 }
 0x194   :  { %v163_v62 = vadd.f32 1e-05, %v161_v59  ;;  %v160_v63 = vmul.f32 %v148_v60, %v148_v60  ;;  %v156_v0 = vmul.f32 0.03125, %v154_v61  ;;  %v158_v10 = vsub.f32 %v1485_v51, %v148_v60  ;;  %v538_v61 = vld [vmem:[%s1885_s2 + $0x10] sm:$0xf] }
 0x196   :  { %1321 = vrsqrt.f32 %v163_v62  ;;  %v162_v1 = vsub.f32 %v156_v0, %v160_v63  ;;  %v539_v62 = vld [vmem:[%s1885_s2 + $0x30] sm:$0xf] }
 0x198   :  { %v164_v3 = vadd.f32 1e-05, %v162_v1 }
 0x19a   :  { %1323 = vrsqrt.f32 %v164_v3  ;;  %v1093_v3 = vcombine.low %v538_v61, %v539_v62  ;;  %v695_v61 = vld [vmem:[%s1885_s2 + $0x174] sm:$0xf] }
 0x1a0   :  { %v1322_v6 = vpop.eup %1321 }
 0x1a1   :  { %v167_v7 = vmul.f32 %v1322_v6, %v157_v5  ;;  %v540_v5 = vld [vmem:[%s1885_s2 + $0x50] sm:$0xf] }
 0x1a2   :  { %v541_v6 = vld [vmem:[%s1885_s2 + $0x70] sm:$0xf] }
 0x1a3   :  { %v173_v13 = vmul.f32 %v172_v8, %v167_v7  ;;  %v1094_v7 = vcombine.low %v540_v5, %v541_v6 }
 0x1a4   :  { %v1324_v11 = vpop.eup %1323 }
 0x1a5   :  { %v168_v12 = vmul.f32 %v1324_v11, %v158_v10  ;;  %v179_v16 = vadd.f32 %v178_v14, %v173_v13  ;;  %v544_v11 = vld [vmem:[%s1885_s2 + $0xd0] sm:$0xf] }
 0x1a7   :  { %v174_v15 = vmul.f32 %v172_v8, %v168_v12  ;;  %v542_v8 = vld [vmem:[%s1885_s2 + $0x90] sm:$0xf] }
 0x1a8   :  { %v1095_v10 = vcombine.low %v542_v8, %v543_v9  ;;  %v545_v12 = vld [vmem:[%s1885_s2 + $0xf0] sm:$0xf] }
 0x1a9   :  { %v180_v17 = vadd.f32 %v178_v14, %v174_v15  ;;  %v1096_v13 = vcombine.low %v544_v11, %v545_v12  ;;  %v546_v14 = vld [vmem:[%s1885_s2 + $0x110] sm:$0xf] }
 0x1aa   :  { %v547_v15 = vld [vmem:[%s1885_s2 + $0x130] sm:$0xf] }
 0x1ab   :  { %v213_v18 = vpack.c.bf16 %v180_v17, %v179_v16  ;;  %v1097_v16 = vcombine.low %v546_v14, %v547_v15  ;;  %v548_v17 = vld [vmem:[%s1885_s2 + $0x150] sm:$0xf] }
 0x1ad   :  { %375 = vmatmul.mubr.bf16.vlgmr.msra.gmra.mrb[0].mxu1 %v213_v18  ;;  %1220 = vmatmul.mubr.bf16.vlgmr.msra.gmra.mrb[4].mxu0 %v213_v18  ;;  %v549_v18 = vld [vmem:[%s1885_s2 + $0x170] sm:$0xf] }
 0x1ae   :  { %1225 = vmatprep.mubr.msk.bf16.mxu1 %vm1354_vm0, %v1353_v2  ;;  %1271 = vmatprep.mubr.msk.bf16.mxu0 %vm1354_vm0, %v1353_v2 }
 0x280   :  { %v376_v19 = vpop.f32.mrb[0].mxu1  ;;  %v419_v20 = vpop.f32.mrb[4].mxu0 }
 0x281   :  { %v378_v21 = vpop.f32.mrb[1].mxu1  ;;  %v1221_v22 = vpop.f32.mrb[5].mxu0 }
 0x282   :  { %v380_v23 = vpop.f32.mrb[2].mxu1  ;;  %v422_v24 = vpop.f32.mrb[6].mxu0 }
 0x283   :  { %v426_v27 = vpack.c.bf16 %v380_v23, %v376_v19  ;;  %v493_v28 = vpack.c.bf16 %v422_v24, %v419_v20  ;;  %v382_v29 = vpop.f32.mrb[3].mxu1  ;;  %v1222_v30 = vpop.f32.mrb[7].mxu0  ;;  %v1098_v19 = vcombine.low %v548_v17, %v549_v18  ;;  %v550_v20 = vld [vmem:[%s1885_s2 + $0x190] sm:$0xf] }
 0x284   :  { %v427_v31 = vpack.c.bf16 %v382_v29, %v378_v21  ;;  %v551_v21 = vld [vmem:[%s1885_s2 + $0x1b0] sm:$0xf] }
 0x285   :  { %v1099_v22 = vcombine.low %v550_v20, %v551_v21  ;;  %v552_v23 = vld [vmem:[%s1885_s2 + $0x1d0] sm:$0xf]  ;;  %v674_v20 = vsub.s32 3, %v1456_v32 }
 0x286   :  { %1224 = vmatpush3.bf16.xpose.msra.mxu1 %v427_v31  ;;  %v553_v24 = vld [vmem:[%s1885_s2 + $0x1f0] sm:$0xf] }
 0x287   :  { %1229 = vmatprep.subr.bf16.mxu1 %v1353_v2 }
 0x28d   :  { %1226 = vmatmul.mubr.bf16.vlgmr.msra.gmra.mrb[4].mxu1 %v426_v27  ;;  %v1100_v27 = vcombine.low %v552_v23, %v553_v24  ;;  %v680_v23 = vsub.s32 4, %v1456_v32 }
 0x28e   :  { %1230 = vmatpush3.bf16.msra.mxu1 %v493_v28  ;;  %1231 = vmatprep.mubr.msk.bf16.mxu1 %vm1354_vm0, %v1353_v2 }
 0x28f   :  { %1235 = vmatprep.subr.bf16.mxu1 %v1353_v2 }
 0x360   :  { %v462_v35 = vpop.f32.mrb[4].mxu1 }
 0x361   :  { %v463_v38 = vadd.f32 %v462_v35, %v23_v33  ;;  %v1227_v39 = vpop.f32.mrb[5].mxu1 }
 0x362   :  { %v465_v41 = vpop.f32.mrb[6].mxu1 }
 0x363   :  { %v466_v42 = vadd.f32 %v465_v41, %v24_v37  ;;  %v1228_v43 = vpop.f32.mrb[7].mxu1  ;;  %v470_v44 = vsel %vm469_vm1, %v463_v38, -inf }
 0x364   :  { %471 = vmax.xlane.f32.xlu0 %v470_v44 }
 0x365   :  { %v473_v45 = vsel %vm469_vm1, %v466_v42, -inf }
 0x366   :  { %474 = vmax.xlane.f32.xlu1 %v473_v45 }
 0x3f1   :  { %v472_v46 = vpop.xlane.xlu0 %471 }
 0x3f2   :  { %v476_v47 = vsub.f32 %v463_v38, %v472_v46  ;;  %v686_v46 = vld [vmem:[%s1885_s2 + $0x54] sm:$0xf] }
 0x3f3   :  { %v475_v48 = vpop.xlane.xlu1 %474 }
 0x3f4   :  { %v478_v50 = vmul.f32 1.442695, %v476_v47  ;;  %v477_v52 = vsub.f32 %v466_v42, %v475_v48  ;;  %v687_v47 = vld [vmem:[%s1885_s2 + $0x74] sm:$0xf] }
 0x3f5   :  { %v1102_v48 = vcombine.low %v686_v46, %v687_v47  ;;  %v812_v47 = vld [vmem:[%s1885_s2 + $0x98] sm:$0xf] }
 0x3f6   :  { %1325 = vpow2.f32 %v478_v50  ;;  %v480_v53 = vmul.f32 1.442695, %v477_v52  ;;  %v688_v50 = vld [vmem:[%s1885_s2 + $0x94] sm:$0xf] }
 0x3f7   :  { %v689_v52 = vld [vmem:[%s1885_s2 + $0xb4] sm:$0xf] }
 0x3f8   :  { %1327 = vpow2.f32 %v480_v53  ;;  %v1103_v53 = vcombine.low %v688_v50, %v689_v52  ;;  %v814_v52 = vld [vmem:[%s1885_s2 + $0xd8] sm:$0xf] }
 0x400   :  { %v1326_v54 = vpop.eup %1325 }
 0x401   :  { %v482_v55 = vsel %vm469_vm1, %v1326_v54, 0.0 }
 0x402   :  { %v1328_v56 = vpop.eup %1327  ;;  %483 = vadd.xlane.f32.xlu0 %v482_v55  ;;  %v691_v55 = vld [vmem:[%s1885_s2 + $0xf4] sm:$0xf] }
 0x403   :  { %v485_v57 = vsel %vm469_vm1, %v1328_v56, 0.0 }
 0x404   :  { %486 = vadd.xlane.f32.xlu1 %v485_v57  ;;  %v692_v57 = vld [vmem:[%s1885_s2 + $0x114] sm:$0xf] }
 0x48f   :  { %v484_v58 = vpop.xlane.xlu0 %483 }
 0x490   :  { %1329 = vrcp.f32 %v484_v58  ;;  %v693_v58 = vld [vmem:[%s1885_s2 + $0x134] sm:$0xf] }
 0x491   :  { %v487_v59 = vpop.xlane.xlu1 %486 }
 0x492   :  { %1331 = vrcp.f32 %v487_v59  ;;  %v1105_v59 = vcombine.low %v692_v57, %v693_v58  ;;  %v818_v58 = vld [vmem:[%s1885_s2 + $0x158] sm:$0xf] }
 0x49a   :  { %v1330_v60 = vpop.eup %1329 }
 0x49b   :  { %v490_v0 = vmul.f32 %v1330_v60, %v1326_v54  ;;  %v690_v54 = vld [vmem:[%s1885_s2 + $0xd4] sm:$0xf] }
 0x49c   :  { %v1332_v63 = vpop.eup %1331  ;;  %v694_v60 = vld [vmem:[%s1885_s2 + $0x154] sm:$0xf] }
 0x49d   :  { %v491_v1 = vmul.f32 %v1332_v63, %v1328_v56  ;;  %v1104_v56 = vcombine.low %v690_v54, %v691_v55  ;;  %v1106_v62 = vcombine.low %v694_v60, %v695_v61  ;;  %v696_v63 = vld [vmem:[%s1885_s2 + $0x194] sm:$0xf]  ;;  %v816_v55 = vld [vmem:[%s1885_s2 + $0x118] sm:$0xf] }
 0x49e   :  { %v820_v61 = vld [vmem:[%s1885_s2 + $0x198] sm:$0xf] }
 0x49f   :  { %v492_v4 = vpack.c.bf16 %v491_v1, %v490_v0  ;;  %v697_v0 = vld [vmem:[%s1885_s2 + $0x1b4] sm:$0xf] }
 0x4a0   :  { %v1107_v1 = vcombine.low %v696_v63, %v697_v0  ;;  %v822_v0 = vld [vmem:[%s1885_s2 + $0x1d8] sm:$0xf] }
 0x4a1   :  { %1232 = vmatmul.mubr.msk.bf16.vlgmr.msra.gmra.mrb[8].mxu1 %vm469_vm1, %v492_v4  ;;  %v699_v4 = vld [vmem:[%s1885_s2 + $0x1f4] sm:$0xf] }
 0x4a2   :  { %1236 = vmatpush3.bf16.msra.mxu1 %v1093_v3  ;;  %1251 = vmatprep.mubr.msk.bf16.mxu1 %vm1354_vm0, %v1353_v2  ;;  %v698_v3 = vld [vmem:[%s1885_s2 + $0x1d4] sm:$0xf] }
 0x4a3   :  { %1237 = vmatprep.subr.bf16.mxu1 %v1353_v2  ;;  %v1108_v5 = vcombine.low %v698_v3, %v699_v4  ;;  %v922_v4 = vld [vmem:[%s1885_s2 + $0x1c] sm:$0xf] }
 0x4a6   :  { %1238 = vmatpush3.bf16.msra.mxu1 %v1094_v7 }
 0x4a7   :  { %1239 = vmatprep.subr.bf16.mxu1 %v1353_v2 }
 0x4aa   :  { %1240 = vmatpush3.bf16.msra.mxu1 %v1095_v10 }
 0x4ab   :  { %1241 = vmatprep.subr.bf16.mxu1 %v1353_v2 }
 0x4ae   :  { %1242 = vmatpush3.bf16.msra.mxu1 %v1096_v13 }
 0x4af   :  { %1243 = vmatprep.subr.bf16.mxu1 %v1353_v2 }
 0x4b2   :  { %1244 = vmatpush3.bf16.msra.mxu1 %v1097_v16 }
 0x4b3   :  { %1245 = vmatprep.subr.bf16.mxu1 %v1353_v2 }
 0x4b6   :  { %1246 = vmatpush3.bf16.msra.mxu1 %v1098_v19 }
 0x4b7   :  { %1247 = vmatprep.subr.bf16.mxu1 %v1353_v2 }
 0x4ba   :  { %1248 = vmatpush3.bf16.msra.mxu1 %v1099_v22  ;;  %v675_v22 = vrot.slane %v1462_v34, %v674_v20  ;;  %v933_v20 = vld [vmem:[%s1885_s2 + $0x17c] sm:$0xf] }
 0x4bb   :  { %1249 = vmatprep.subr.bf16.mxu1 %v1353_v2 }
 0x4be   :  { %1250 = vmatpush3.bf16.msra.mxu1 %v1100_v27 }
 0x4bf   :  { %1275 = vmatprep.subr.bf16.mxu1 %v1353_v2 }
 0x574   :  { %v531_v28 = vpop.f32.mrb[8].mxu1 }
 0x575   :  { %v1233_v29 = vpop.f32.mrb[9].mxu1 }
 0x576   :  { %v534_v30 = vpop.f32.mrb[10].mxu1 }
 0x577   :  { %v554_v31 = vpack.c.bf16 %v534_v30, %v531_v28  ;;  %v1234_v33 = vpop.f32.mrb[11].mxu1 }
 0x578   :  { %v681_v33 = vrot.slane %v1462_v34, %v680_v23 }
 0x579   :  { %1252 = vmatmul.mubr.bf16.vlgmr.msra.gmra.mrb[12].mxu1 %v554_v31 }
 0x57a   :  { %1291 = vmatprep.mubr.msk.bf16.mxu1 %vm1354_vm0, %v1353_v2 }
 0x64c   :  { %v637_v35 = vpop.f32.mrb[12].mxu1 }
 0x64d   :  { %v1678_v37 = vadd.f32 %v637_v35, %v1483_v49  ;;  %v1253_v38 = vpop.f32.mrb[13].mxu1  ;;  %v684_v49 = vld [vmem:[%s1885_s2 + $0x14] sm:$0xf] }
 0x64e   :  { %v640_v39 = vpop.f32.mrb[14].mxu1 }
 0x64f   :  { %v1681_v41 = vadd.f32 %v640_v39, %v1485_v51  ;;  %646 = vadd.xlane.f32.xlu0 %v1678_v37  ;;  %v1254_v42 = vpop.f32.mrb[15].mxu1  ;;  %v652_v43 = vmul.f32 %v1678_v37, %v1678_v37  ;;  %v685_v51 = vld [vmem:[%s1885_s2 + $0x34] sm:$0xf] }
 0x650   :  { %v1101_v45 = vcombine.low %v684_v49, %v685_v51  ;;  %v810_v51 = vld [vmem:[%s1885_s2 + $0x58] sm:$0xf] }
 0x651   :  { %648 = vadd.xlane.f32.xlu1 %v1681_v41  ;;  %v653_v44 = vmul.f32 %v1681_v41, %v1681_v41 }
 0x652   :  { %1256 = vmatpush3.bf16.msra.mxu0 %v1101_v45  ;;  %v811_v45 = vld [vmem:[%s1885_s2 + $0x78] sm:$0xf] }
 0x653   :  { %654 = vadd.xlane.f32.xlu0 %v652_v43  ;;  %1257 = vmatprep.subr.bf16.mxu0 %v1353_v2  ;;  %v808_v43 = vld [vmem:[%s1885_s2 + $0x18] sm:$0xf]  ;;  %v1110_v46 = vcombine.low %v810_v51, %v811_v45 }
 0x655   :  { %656 = vadd.xlane.f32.xlu1 %v653_v44  ;;  %v809_v44 = vld [vmem:[%s1885_s2 + $0x38] sm:$0xf] }
 0x656   :  { %1258 = vmatpush3.bf16.msra.mxu0 %v1102_v48  ;;  %v1109_v49 = vcombine.low %v808_v43, %v809_v44  ;;  %v813_v48 = vld [vmem:[%s1885_s2 + $0xb8] sm:$0xf] }
 0x657   :  { %1259 = vmatprep.subr.bf16.mxu0 %v1353_v2  ;;  %v1111_v50 = vcombine.low %v812_v47, %v813_v48 }
 0x658   :  { %1276 = vmatpush3.bf16.msra.mxu1 %v1109_v49 }
 0x659   :  { %1277 = vmatprep.subr.bf16.mxu1 %v1353_v2 }
 0x65a   :  { %1260 = vmatpush3.bf16.msra.mxu0 %v1103_v53  ;;  %v815_v53 = vld [vmem:[%s1885_s2 + $0xf8] sm:$0xf] }
 0x65b   :  { %1261 = vmatprep.subr.bf16.mxu0 %v1353_v2  ;;  %v1112_v54 = vcombine.low %v814_v52, %v815_v53  ;;  %v934_v53 = vld [vmem:[%s1885_s2 + $0x19c] sm:$0xf] }
 0x65c   :  { %1278 = vmatpush3.bf16.msra.mxu1 %v1110_v46 }
 0x65d   :  { %1279 = vmatprep.subr.bf16.mxu1 %v1353_v2 }
 0x65e   :  { %1262 = vmatpush3.bf16.msra.mxu0 %v1104_v56  ;;  %v817_v56 = vld [vmem:[%s1885_s2 + $0x138] sm:$0xf] }
 0x65f   :  { %1263 = vmatprep.subr.bf16.mxu0 %v1353_v2  ;;  %v1113_v57 = vcombine.low %v816_v55, %v817_v56  ;;  %v936_v56 = vld [vmem:[%s1885_s2 + $0x1dc] sm:$0xf] }
 0x660   :  { %1280 = vmatpush3.bf16.msra.mxu1 %v1111_v50 }
 0x661   :  { %1281 = vmatprep.subr.bf16.mxu1 %v1353_v2 }
 0x662   :  { %1264 = vmatpush3.bf16.msra.mxu0 %v1105_v59  ;;  %v819_v59 = vld [vmem:[%s1885_s2 + $0x178] sm:$0xf] }
 0x663   :  { %1265 = vmatprep.subr.bf16.mxu0 %v1353_v2  ;;  %v1114_v60 = vcombine.low %v818_v58, %v819_v59  ;;  %v918_v59 = vsub.s32 5, %v1456_v32 }
 0x664   :  { %1282 = vmatpush3.bf16.msra.mxu1 %v1112_v54  ;;  %v935_v54 = vld [vmem:[%s1885_s2 + $0x1bc] sm:$0xf] }
 0x665   :  { %1283 = vmatprep.subr.bf16.mxu1 %v1353_v2  ;;  %v1123_v55 = vcombine.low %v934_v53, %v935_v54 }
 0x666   :  { %1266 = vmatpush3.bf16.msra.mxu0 %v1106_v62  ;;  %v821_v62 = vld [vmem:[%s1885_s2 + $0x1b8] sm:$0xf] }
 0x667   :  { %1267 = vmatprep.subr.bf16.mxu0 %v1353_v2  ;;  %v1115_v63 = vcombine.low %v820_v61, %v821_v62  ;;  %v919_v62 = vrot.slane %v1462_v34, %v918_v59 }
 0x668   :  { %1284 = vmatpush3.bf16.msra.mxu1 %v1113_v57  ;;  %v937_v57 = vld [vmem:[%s1885_s2 + $0x1fc] sm:$0xf] }
 0x669   :  { %1285 = vmatprep.subr.bf16.mxu1 %v1353_v2  ;;  %v1124_v58 = vcombine.low %v936_v56, %v937_v57 }
 0x66a   :  { %1268 = vmatpush3.bf16.msra.mxu0 %v1107_v1  ;;  %v823_v1 = vld [vmem:[%s1885_s2 + $0x1f8] sm:$0xf] }
 0x66b   :  { %1269 = vmatprep.subr.bf16.mxu0 %v1353_v2  ;;  %v1116_v3 = vcombine.low %v822_v0, %v823_v1 }
 0x66c   :  { %1286 = vmatpush3.bf16.msra.mxu1 %v1114_v60 }
 0x66d   :  { %1287 = vmatprep.subr.bf16.mxu1 %v1353_v2 }
 0x66e   :  { %1270 = vmatpush3.bf16.msra.mxu0 %v1108_v5  ;;  %v923_v5 = vld [vmem:[%s1885_s2 + $0x3c] sm:$0xf] }
 0x66f   :  { %1295 = vmatprep.subr.bf16.mxu0 %v1353_v2 }
 0x670   :  { %1288 = vmatpush3.bf16.msra.mxu1 %v1115_v63 }
 0x671   :  { %1289 = vmatprep.subr.bf16.mxu1 %v1353_v2 }
 0x674   :  { %1290 = vmatpush3.bf16.msra.mxu1 %v1116_v3 }
 0x6dc   :  { %v647_v6 = vpop.xlane.xlu0 %646 }
 0x6dd   :  { %v650_v7 = vmul.f32 0.03125, %v647_v6  ;;  %v924_v6 = vld [vmem:[%s1885_s2 + $0x5c] sm:$0xf] }
 0x6de   :  { %v649_v8 = vpop.xlane.xlu1 %648 }
 0x6df   :  { %v651_v9 = vmul.f32 0.03125, %v649_v8  ;;  %v662_v11 = vmul.f32 %v650_v7, %v650_v7  ;;  %v660_v21 = vsub.f32 %v1678_v37, %v650_v7  ;;  %v1117_v7 = vcombine.low %v922_v4, %v923_v5  ;;  %v925_v8 = vld [vmem:[%s1885_s2 + $0x7c] sm:$0xf] }
 0x6e0   :  { %v655_v10 = vpop.xlane.xlu0 %654 }
 0x6e1   :  { %v658_v12 = vmul.f32 0.03125, %v655_v10  ;;  %v663_v14 = vmul.f32 %v651_v9, %v651_v9  ;;  %v661_v27 = vsub.f32 %v1681_v41, %v651_v9  ;;  %v1118_v9 = vcombine.low %v924_v6, %v925_v8  ;;  %v926_v10 = vld [vmem:[%s1885_s2 + $0x9c] sm:$0xf] }
 0x6e2   :  { %v657_v13 = vpop.xlane.xlu1 %656 }
 0x6e3   :  { %v664_v15 = vsub.f32 %v658_v12, %v662_v11  ;;  %v659_v16 = vmul.f32 0.03125, %v657_v13  ;;  %v927_v11 = vld [vmem:[%s1885_s2 + $0xbc] sm:$0xf] }
 0x6e4   :  { %v1119_v12 = vcombine.low %v926_v10, %v927_v11  ;;  %v928_v13 = vld [vmem:[%s1885_s2 + $0xdc] sm:$0xf] }
 0x6e5   :  { %v666_v17 = vadd.f32 1e-05, %v664_v15  ;;  %v665_v18 = vsub.f32 %v659_v16, %v663_v14  ;;  %v929_v14 = vld [vmem:[%s1885_s2 + $0xfc] sm:$0xf] }
 0x6e6   :  { %v1120_v15 = vcombine.low %v928_v13, %v929_v14  ;;  %v930_v16 = vld [vmem:[%s1885_s2 + $0x11c] sm:$0xf] }
 0x6e7   :  { %1333 = vrsqrt.f32 %v666_v17  ;;  %v667_v19 = vadd.f32 1e-05, %v665_v18  ;;  %v931_v17 = vld [vmem:[%s1885_s2 + $0x13c] sm:$0xf] }
 0x6e8   :  { %v1121_v18 = vcombine.low %v930_v16, %v931_v17 }
 0x6e9   :  { %1335 = vrsqrt.f32 %v667_v19  ;;  %v932_v19 = vld [vmem:[%s1885_s2 + $0x15c] sm:$0xf] }
 0x6f1   :  { %v1334_v24 = vpop.eup %1333 }
 0x6f2   :  { %v670_v28 = vmul.f32 %v1334_v24, %v660_v21  ;;  %v1122_v21 = vcombine.low %v932_v19, %v933_v20 }
 0x6f3   :  { %v1336_v29 = vpop.eup %1335 }
 0x6f4   :  { %v671_v30 = vmul.f32 %v1336_v29, %v661_v27  ;;  %v676_v31 = vmul.f32 %v675_v22, %v670_v28 }
 0x6f6   :  { %v677_v35 = vmul.f32 %v675_v22, %v671_v30  ;;  %v682_v38 = vadd.f32 %v681_v33, %v676_v31 }
 0x6f8   :  { %v683_v39 = vadd.f32 %v681_v33, %v677_v35 }
 0x6fa   :  { %v700_v42 = vpack.c.bf16 %v683_v39, %v682_v38 }
 0x6fc   :  { %1272 = vmatmul.mubr.bf16.vlgmr.msra.gmra.mrb[8].mxu0 %v700_v42 }
 0x6fd   :  { %1311 = vmatprep.mubr.msk.bf16.mxu0 %vm1354_vm0, %v1353_v2  ;;  %1296 = vmatpush3.bf16.msra.mxu0 %v1117_v7 }
 0x6fe   :  { %1297 = vmatprep.subr.bf16.mxu0 %v1353_v2 }
 0x701   :  { %1298 = vmatpush3.bf16.msra.mxu0 %v1118_v9 }
 0x702   :  { %1299 = vmatprep.subr.bf16.mxu0 %v1353_v2 }
 0x705   :  { %1300 = vmatpush3.bf16.msra.mxu0 %v1119_v12 }
 0x706   :  { %1301 = vmatprep.subr.bf16.mxu0 %v1353_v2 }
 0x709   :  { %1302 = vmatpush3.bf16.msra.mxu0 %v1120_v15 }
 0x70a   :  { %1303 = vmatprep.subr.bf16.mxu0 %v1353_v2 }
 0x70d   :  { %1304 = vmatpush3.bf16.msra.mxu0 %v1121_v18 }
 0x70e   :  { %1305 = vmatprep.subr.bf16.mxu0 %v1353_v2 }
 0x711   :  { %1306 = vmatpush3.bf16.msra.mxu0 %v1122_v21 }
 0x712   :  { %1307 = vmatprep.subr.bf16.mxu0 %v1353_v2 }
 0x715   :  { %1308 = vmatpush3.bf16.msra.mxu0 %v1123_v55 }
 0x716   :  { %1309 = vmatprep.subr.bf16.mxu0 %v1353_v2 }
 0x719   :  { %1310 = vmatpush3.bf16.msra.mxu0 %v1124_v58 }
 0x7cf   :  { %v783_v22 = vpop.f32.mrb[8].mxu0 }
 0x7d0   :  { %v790_v23 = vmul.f32 %v783_v22, %v783_v22  ;;  %v1273_v24 = vpop.f32.mrb[9].mxu0 }
 0x7d1   :  { %v786_v27 = vpop.f32.mrb[10].mxu0 }
 0x7d2   :  { %v792_v28 = vmul.f32 %v790_v23, %v783_v22  ;;  %v791_v29 = vmul.f32 %v786_v27, %v786_v27  ;;  %v1274_v30 = vpop.f32.mrb[11].mxu0 }
 0x7d4   :  { %v794_v31 = vmul.f32 0.044715, %v792_v28  ;;  %v793_v33 = vmul.f32 %v791_v29, %v786_v27 }
 0x7d6   :  { %v796_v35 = vadd.f32 %v794_v31, %v783_v22  ;;  %v795_v38 = vmul.f32 0.044715, %v793_v33 }
 0x7d8   :  { %v798_v39 = vmul.f32 0.7978846, %v796_v35  ;;  %v797_v42 = vadd.f32 %v795_v38, %v786_v27 }
 0x7da   :  { %1337 = vtanh.f32 %v798_v39  ;;  %v799_v43 = vmul.f32 0.7978846, %v797_v42 }
 0x7dc   :  { %1339 = vtanh.f32 %v799_v43 }
 0x7e4   :  { %v1338_v44 = vpop.eup %1337 }
 0x7e5   :  { %v802_v49 = vadd.f32 1.0, %v1338_v44 }
 0x7e6   :  { %v1340_v51 = vpop.eup %1339 }
 0x7e7   :  { %v804_v45 = vmul.f32 0.5, %v802_v49  ;;  %v803_v46 = vadd.f32 1.0, %v1340_v51 }
 0x7e9   :  { %v805_v47 = vmul.f32 0.5, %v803_v46  ;;  %v806_v48 = vmul.f32 %v804_v45, %v783_v22 }
 0x7eb   :  { %v807_v50 = vmul.f32 %v805_v47, %v786_v27 }
 0x7ed   :  { %v824_v52 = vpack.c.bf16 %v807_v50, %v806_v48 }
 0x7ef   :  { %1292 = vmatmul.mubr.bf16.vlgmr.msra.gmra.mrb[16].mxu1 %v824_v52 }
 0x8c2   :  { %v907_v60 = vpop.f32.mrb[16].mxu1 }
 0x8c3   :  { %v914_v61 = vadd.f32 %v907_v60, %v1678_v37  ;;  %v1293_v63 = vpop.f32.mrb[17].mxu1 }
 0x8c4   :  { %v910_v0 = vpop.f32.mrb[18].mxu1 }
 0x8c5   :  { %v915_v2 = vadd.f32 %v910_v0, %v1681_v41  ;;  %v1294_v1 = vpop.f32.mrb[19].mxu1  ;;  %v920_v3 = vadd.f32 %v919_v62, %v914_v61 }
 0x8c7   :  { %v921_v4 = vadd.f32 %v919_v62, %v915_v2 }
 0x8c9   :  { %v938_v5 = vpack.c.bf16 %v921_v4, %v920_v3 }
 0x8cb   :  { %1312 = vmatmul.mubr.bf16.vlgmr.msra.gmra.mrb[12].mxu0 %v938_v5 }
 0x99e   :  { %v1021_v6 = vpop.f32.mrb[12].mxu0 }
 0x99f   :  { %v1028_v7 = vsub.f32 %v1021_v6, %v1437_v25  ;;  %v1313_v8 = vpop.f32.mrb[13].mxu0 }
 0x9a0   :  { %v1024_v9 = vpop.f32.mrb[14].mxu0 }
 0x9a1   :  { %v1030_v32 = vand.u32 2147483647, %v1028_v7  ;;  %v1029_v10 = vsub.f32 %v1024_v9, %v1442_v26  ;;  %v1314_v37 = vpop.f32.mrb[15].mxu0 }
 0x9a3   :  { %v1031_v11 = vand.u32 2147483647, %v1029_v10  ;;  %v1032_v34 = vmul.f32 %v1030_v32, %v1468_v36 }
 0x9a5   :  { %v1033_v12 = vmul.f32 %v1031_v11, %v1473_v40 }
 0x9a7   :  { %v1034_v41 = vadd.f32 %v1033_v12, %v1032_v34 }
 0x9a9   :  { %1035 = vadd.xlane.f32.xlu0 %v1034_v41 }
 0xa36   :  { %v1036_v13 = vpop.xlane.xlu0 %1035 }
 0xa37   :  { %v1037_v14 = vrot.slane %v1036_v13, 4 }
 0xa39   :  { %v1038_v15 = vadd.f32 %v1037_v14, %v1036_v13 }
 0xa3b   :  { %v1039_v16 = vrot.slane %v1038_v15, 2 }
 0xa3d   :  { %v1040_v17 = vadd.f32 %v1039_v16, %v1038_v15 }
 0xa3f   :  { %v1041_v18 = vrot.slane %v1040_v17, 1 }
 0xa41   :  { %v1042_v25 = vadd.f32 %v1041_v18, %v1040_v17 }
 0xa43   :  { %1315 = vpush %v1042_v25 }
 0xa74   :  { %s1316_s2 = spop %1315 }
 0xa75   :  { %s1044_s26 = smul.f32 0.0009765625, %s1316_s2 }
 0xa77   :  { %1046 = sst [smem:[#allocation2]] %s1044_s26 }
 0xa78   :  { %1350 = shalt.err (!%p1347_p2)
}
 0xa79   :  { %s1356_s7 = smov [#allocation2]  }
 0xa7a   :  { %1054 = dma.smem_to_hbm %s1356_s7, 16, %s1886_s3, [#allocation3]  }
 0xa7b   :  { %1351 = dma.done.wait [#allocation3], 16  }
 0xa7c   :  { %1352 = vsyncadd [#allocation3], 4294967280 }
 0xa7d   :  { %1058 = sfence }
 0xa7e   :  { %1059 = vsyncpa [#allocation3], 1 }

</bundles_post_ra>
